<compile_context>
chip_gen: v7x
topology: tpu7x:2x2x1
jax: 0.10.0
libtpu: 0.0.40
codegen_flags: <defaults>
</compile_context>

<pallas_src>
import functools

import jax
import jax.numpy as jnp
from jax.experimental import pallas as pl
from jax.experimental.pallas import tpu as pltpu


# ------------------------------- Pallas kernel -------------------------------

def _bottleneck_kernel(x_ref, w1_ref, s1_ref, t1_ref,
                       w2f_ref, s2_ref, t2_ref,
                       w3_ref, s3_ref, t3_ref,
                       mask_ref, o_ref, *, PW, NPA):
    """One batch element, everything on the flattened (H+4)*(W+4) plane.

    x_ref   : (Cin, NPA)  bf16   input placed at offset (2,2) of a zero plane
    w1_ref  : (Cmid, Cin) bf16   stage-1 1x1 weights (transposed)
    w2f_ref : (Cmid, 9*Cmid) bf16 stage-2 3x3 weights flattened [co, k*Cmid+ci]
    w3_ref  : (Cout, Cmid) bf16  stage-3 1x1 weights (transposed)
    s*/t*   : (C, 1) f32         BN scale / bias-folded shift per channel
    mask_ref: (1, NPA) f32       1.0 on the inner (H+2)x(W+2) region, else 0
    o_ref   : (Cout, NPA) f32    output plane, lane-dense
    """
    f32 = jnp.float32
    bf = jnp.bfloat16

    m = mask_ref[...] != 0.0                                   # (1, NPA) bool

    # ---- stage 1: 1x1 conv (pad=1) + BN + ReLU ------------------------------
    # zero input lanes in the pad ring automatically give relu(t1') there.
    a1 = jnp.dot(w1_ref[...], x_ref[...],
                 preferred_element_type=f32)                   # (Cmid, NPA)
    y1 = jnp.maximum(a1 * s1_ref[...] + t1_ref[...], 0.0)
    # zero everything outside the inner region = 3x3 conv's zero padding.
    p1 = jnp.where(m, y1, 0.0)                                 # (Cmid, NPA) f32

    # ---- stage 2: 3x3 conv (pad=1) + BN + ReLU as ONE K=72 dot --------------
    # 9 lane-rotated copies of the plane; wrap-around only touches lanes that
    # are masked out downstream (inner lanes never read across the plane edge).
    parts = []
    for k in range(9):
        off = (k // 3 - 1) * PW + (k % 3 - 1)
        parts.append(p1 if off == 0
                     else pltpu.roll(p1, (-off) % NPA, axis=1))
    stack = jnp.concatenate(parts, axis=0).astype(bf)          # (9*Cmid, NPA)
    a2 = jnp.dot(w2f_ref[...], stack,
                 preferred_element_type=f32)                   # (Cmid, NPA)
    y2 = jnp.maximum(a2 * s2_ref[...] + t2_ref[...], 0.0)

    # ---- stage 3: 1x1 conv (pad=1) + BN + ReLU, border selected in ----------
    a3 = jnp.dot(w3_ref[...], y2.astype(bf),
                 preferred_element_type=f32)                   # (Cout, NPA)
    y3 = jnp.maximum(a3 * s3_ref[...] + t3_ref[...], 0.0)
    border3 = jnp.maximum(t3_ref[...], 0.0)                    # (Cout, 1)
    o_ref[...] = jnp.where(m, y3, border3).astype(o_ref.dtype)


# -------------------------------- JAX wrapper --------------------------------

def bottleneck_conv_forward(x_nchw, p):
    N, Cin, H, W = x_nchw.shape
    Cmid = p['w1'].shape[1]
    Cout = p['w3'].shape[1]
    PH, PW = H + 4, W + 4
    NP = PH * PW
    NPA = ((NP + 127) // 128) * 128                # lane-aligned plane length
    f32 = jnp.float32
    bf = jnp.bfloat16

    # Fold conv bias into the BN shift: (y + b)*s + t == y*s + (b*s + t).
    w1t = p['w1'].T.astype(bf)                                   # (Cmid, Cin)
    s1 = p['s1'].reshape(Cmid, 1)
    t1b = (p['b1'] * p['s1'] + p['t1']).reshape(Cmid, 1)
    # w2 is HWIO (kh, kw, ci, co) -> (co, kh, kw, ci) -> (Cmid, 9*Cmid)
    w2f = jnp.transpose(p['w2'], (3, 0, 1, 2)).reshape(Cmid, 9 * Cmid).astype(bf)
    s2 = p['s2'].reshape(Cmid, 1)
    t2b = (p['b2'] * p['s2'] + p['t2']).reshape(Cmid, 1)
    w3t = p['w3'].T.astype(bf)                                   # (Cout, Cmid)
    s3 = p['s3'].reshape(Cout, 1)
    t3b = (p['b3'] * p['s3'] + p['t3']).reshape(Cout, 1)

    # 0/1 mask of the inner (H+2)x(W+2) region of the (PH, PW) plane,
    # flattened and lane-padded to NPA.
    r = jnp.arange(PH)
    c = jnp.arange(PW)
    inner = ((r[:, None] >= 1) & (r[:, None] <= H + 2) &
             (c[None, :] >= 1) & (c[None, :] <= W + 2))
    mask = jnp.pad(inner.reshape(1, NP).astype(f32), ((0, 0), (0, NPA - NP)))

    # Input placed at offset (2, 2) of a zero (PH, PW) plane (covers the pad=1
    # of conv1 plus the pad=1 of conv2), flattened, lane-padded, bf16.
    x_plane = jnp.pad(x_nchw, ((0, 0), (0, 0), (2, 2), (2, 2)))
    x_plane = x_plane.reshape(N, Cin, NP)
    x_plane = jnp.pad(x_plane, ((0, 0), (0, 0), (0, NPA - NP))).astype(bf)

    kernel = functools.partial(_bottleneck_kernel, PW=PW, NPA=NPA)

    def const(shape):
        return pl.BlockSpec(shape, lambda n, _s=len(shape): (0,) * _s)

    out = pl.pallas_call(
        kernel,
        out_shape=jax.ShapeDtypeStruct((N, Cout, NPA), x_nchw.dtype),
        grid=(N,),
        in_specs=[
            pl.BlockSpec((None, Cin, NPA), lambda n: (n, 0, 0)),
            const((Cmid, Cin)), const((Cmid, 1)), const((Cmid, 1)),
            const((Cmid, 9 * Cmid)), const((Cmid, 1)), const((Cmid, 1)),
            const((Cout, Cmid)), const((Cout, 1)), const((Cout, 1)),
            const((1, NPA)),
        ],
        out_specs=pl.BlockSpec((None, Cout, NPA), lambda n: (n, 0, 0)),
        compiler_params=pltpu.CompilerParams(
            dimension_semantics=("parallel",)),
    )(x_plane, w1t, s1, t1b, w2f, s2, t2b, w3t, s3, t3b, mask)

    return out[:, :, :NP].reshape(N, Cout, PH, PW)       # free slice+reshape


# ------------------------------ pure-JAX reference ---------------------------

def _ref_conv_bn_relu(x, w_oihw, b, s, t, pad):
    y = jax.lax.conv_general_dilated(
        x.astype(jnp.bfloat16), w_oihw.astype(jnp.bfloat16),
        window_strides=(1, 1), padding=((pad, pad), (pad, pad)),
        dimension_numbers=('NCHW', 'OIHW', 'NCHW'),
        preferred_element_type=jnp.float32)
    y = (y + b[None, :, None, None]) * s[None, :, None, None] \
        + t[None, :, None, None]
    return jnp.maximum(y, 0.0)


def bottleneck_conv_reference(x, p):
    mid = p['w1'].shape[1]
    out = p['w3'].shape[1]
    w1 = p['w1'].T.reshape(mid, -1, 1, 1)                  # (Cmid, Cin, 1, 1)
    w2 = jnp.transpose(p['w2'], (3, 2, 0, 1))              # HWIO -> OIHW
    w3 = p['w3'].T.reshape(out, mid, 1, 1)
    y = _ref_conv_bn_relu(x, w1, p['b1'], p['s1'], p['t1'], 1)
    y = _ref_conv_bn_relu(y, w2, p['b2'], p['s2'], p['t2'], 1)
    y = _ref_conv_bn_relu(y, w3, p['b3'], p['s3'], p['t3'], 1)
    return y


# ------------------------------------ main ------------------------------------

def _fold_bn(kg, kb, km, kv, c, eps=1e-5):
    gamma = 1.0 + 0.1 * jax.random.normal(kg, (c,), jnp.float32)
    beta = 0.1 * jax.random.normal(kb, (c,), jnp.float32)
    mean = 0.1 * jax.random.normal(km, (c,), jnp.float32)
    var = jnp.abs(jax.random.normal(kv, (c,), jnp.float32)) + 0.5
    scale = gamma / jnp.sqrt(var + eps)
    shift = beta - mean * scale
    return scale, shift


if __name__ == "__main__":
    in_ch, mid_ch, out_ch = 4, 8, 16
    N, H, W = 2, 16, 16

    key = jax.random.PRNGKey(0)
    ks = jax.random.split(key, 20)

    x = jax.random.normal(ks[0], (N, in_ch, H, W), jnp.float32)

    s1, t1 = _fold_bn(ks[4], ks[5], ks[6], ks[7], mid_ch)
    s2, t2 = _fold_bn(ks[8], ks[9], ks[10], ks[11], mid_ch)
    s3, t3 = _fold_bn(ks[12], ks[13], ks[14], ks[15], out_ch)

    params = {
        'w1': 0.3 * jax.random.normal(ks[1], (in_ch, mid_ch), jnp.float32),
        'b1': 0.1 * jax.random.normal(ks[16], (mid_ch,), jnp.float32),
        's1': s1, 't1': t1,
        'w2': 0.2 * jax.random.normal(ks[2], (3, 3, mid_ch, mid_ch), jnp.float32),
        'b2': 0.1 * jax.random.normal(ks[17], (mid_ch,), jnp.float32),
        's2': s2, 't2': t2,
        'w3': 0.3 * jax.random.normal(ks[3], (mid_ch, out_ch), jnp.float32),
        'b3': 0.1 * jax.random.normal(ks[18], (out_ch,), jnp.float32),
        's3': s3, 't3': t3,
    }

    fwd = jax.jit(bottleneck_conv_forward)
    out = jax.block_until_ready(fwd(x, params))
    assert out.shape == (N, out_ch, H + 4, W + 4), out.shape

    ref = jax.block_until_ready(bottleneck_conv_reference(x, params))
    max_err = float(jnp.max(jnp.abs(out - ref)))
    assert jnp.allclose(out, ref, rtol=1e-2, atol=1e-2), max_err

    print("KERNEL_OK")
</pallas_src>

<mosaic_0001>
module attributes {stable_mosaic.version = 11 : i64} {
  func.func @_bottleneck_kernel(%arg0: i32, %arg1: memref<1x4x512xbf16, #tpu.memory_space<vmem>>, %arg2: memref<8x4xbf16, #tpu.memory_space<vmem>>, %arg3: memref<8x1xf32, #tpu.memory_space<vmem>>, %arg4: memref<8x1xf32, #tpu.memory_space<vmem>>, %arg5: memref<8x72xbf16, #tpu.memory_space<vmem>>, %arg6: memref<8x1xf32, #tpu.memory_space<vmem>>, %arg7: memref<8x1xf32, #tpu.memory_space<vmem>>, %arg8: memref<16x8xbf16, #tpu.memory_space<vmem>>, %arg9: memref<16x1xf32, #tpu.memory_space<vmem>>, %arg10: memref<16x1xf32, #tpu.memory_space<vmem>>, %arg11: memref<1x512xf32, #tpu.memory_space<vmem>>, %arg12: memref<1x16x512xf32, #tpu.memory_space<vmem>>) attributes {dimension_semantics = [#tpu.dimension_semantics<parallel>], iteration_bounds = array<i64: 2>, scalar_prefetch = 0 : i64, scratch_operands = 0 : i64, tpu.core_type = #tpu.core_type<tc>, window_params = [{transform_indices = @transform_0, window_bounds = array<i64: 1, 4, 512>}, {pipeline_mode = #tpu.pipeline_mode<synchronous>, transform_indices = @transform_1, window_bounds = array<i64: 8, 4>}, {pipeline_mode = #tpu.pipeline_mode<synchronous>, transform_indices = @transform_2, window_bounds = array<i64: 8, 1>}, {pipeline_mode = #tpu.pipeline_mode<synchronous>, transform_indices = @transform_3, window_bounds = array<i64: 8, 1>}, {pipeline_mode = #tpu.pipeline_mode<synchronous>, transform_indices = @transform_4, window_bounds = array<i64: 8, 72>}, {pipeline_mode = #tpu.pipeline_mode<synchronous>, transform_indices = @transform_5, window_bounds = array<i64: 8, 1>}, {pipeline_mode = #tpu.pipeline_mode<synchronous>, transform_indices = @transform_6, window_bounds = array<i64: 8, 1>}, {pipeline_mode = #tpu.pipeline_mode<synchronous>, transform_indices = @transform_7, window_bounds = array<i64: 16, 8>}, {pipeline_mode = #tpu.pipeline_mode<synchronous>, transform_indices = @transform_8, window_bounds = array<i64: 16, 1>}, {pipeline_mode = #tpu.pipeline_mode<synchronous>, transform_indices = @transform_9, window_bounds = array<i64: 16, 1>}, {pipeline_mode = #tpu.pipeline_mode<synchronous>, transform_indices = @transform_10, window_bounds = array<i64: 1, 512>}, {transform_indices = @transform_11, window_bounds = array<i64: 1, 16, 512>}]} {
    %c0 = arith.constant 0 : index
    %c0_0 = arith.constant 0 : index
    %0 = vector.load %arg11[%c0, %c0_0] : memref<1x512xf32, #tpu.memory_space<vmem>>, vector<1x512xf32>
    %cst = arith.constant 0.000000e+00 : f32
    %1 = vector.broadcast %cst : f32 to vector<1x512xf32>
    %2 = arith.cmpf one, %0, %1 : vector<1x512xf32>
    %c0_1 = arith.constant 0 : index
    %c0_2 = arith.constant 0 : index
    %3 = vector.load %arg2[%c0_1, %c0_2] : memref<8x4xbf16, #tpu.memory_space<vmem>>, vector<8x4xbf16>
    %c0_3 = arith.constant 0 : index
    %c0_4 = arith.constant 0 : index
    %c0_5 = arith.constant 0 : index
    %4 = vector.load %arg1[%c0_3, %c0_4, %c0_5] : memref<1x4x512xbf16, #tpu.memory_space<vmem>>, vector<1x4x512xbf16>
    %5 = vector.shape_cast %4 : vector<1x4x512xbf16> to vector<4x512xbf16>
    %cst_6 = arith.constant dense<0.000000e+00> : vector<8x512xf32>
    %6 = tpu.matmul %3, %5, %cst_6 {dimension_numbers = #tpu.dot_dimension_numbers<[1], [0], [0], [1], [0, 0, 1, 1], [], []>} : vector<8x4xbf16>, vector<4x512xbf16>, vector<8x512xf32> -> vector<8x512xf32>
    %c0_7 = arith.constant 0 : index
    %c0_8 = arith.constant 0 : index
    %7 = vector.load %arg3[%c0_7, %c0_8] : memref<8x1xf32, #tpu.memory_space<vmem>>, vector<8x1xf32>
    %8 = vector.broadcast %7 : vector<8x1xf32> to vector<8x512xf32>
    %9 = arith.mulf %6, %8 : vector<8x512xf32>
    %c0_9 = arith.constant 0 : index
    %c0_10 = arith.constant 0 : index
    %10 = vector.load %arg4[%c0_9, %c0_10] : memref<8x1xf32, #tpu.memory_space<vmem>>, vector<8x1xf32>
    %11 = vector.broadcast %10 : vector<8x1xf32> to vector<8x512xf32>
    %12 = arith.addf %9, %11 : vector<8x512xf32>
    %cst_11 = arith.constant 0.000000e+00 : f32
    %13 = vector.broadcast %cst_11 : f32 to vector<8x512xf32>
    %14 = arith.maximumf %12, %13 : vector<8x512xf32>
    %cst_12 = arith.constant 0.000000e+00 : f32
    %15 = vector.shape_cast %2 : vector<1x512xi1> to vector<1x512xi1>
    %16 = vector.broadcast %15 : vector<1x512xi1> to vector<8x512xi1>
    %17 = vector.broadcast %cst_12 : f32 to vector<8x512xf32>
    %18 = arith.select %16, %14, %17 : vector<8x512xi1>, vector<8x512xf32>
    %c21_i32 = arith.constant 21 : i32
    %19 = tpu.dynamic_rotate %18 by %c21_i32 dim 1 : vector<8x512xf32>, i32 -> vector<8x512xf32>
    %c20_i32 = arith.constant 20 : i32
    %20 = tpu.dynamic_rotate %18 by %c20_i32 dim 1 : vector<8x512xf32>, i32 -> vector<8x512xf32>
    %c19_i32 = arith.constant 19 : i32
    %21 = tpu.dynamic_rotate %18 by %c19_i32 dim 1 : vector<8x512xf32>, i32 -> vector<8x512xf32>
    %c1_i32 = arith.constant 1 : i32
    %22 = tpu.dynamic_rotate %18 by %c1_i32 dim 1 : vector<8x512xf32>, i32 -> vector<8x512xf32>
    %c511_i32 = arith.constant 511 : i32
    %23 = tpu.dynamic_rotate %18 by %c511_i32 dim 1 : vector<8x512xf32>, i32 -> vector<8x512xf32>
    %c493_i32 = arith.constant 493 : i32
    %24 = tpu.dynamic_rotate %18 by %c493_i32 dim 1 : vector<8x512xf32>, i32 -> vector<8x512xf32>
    %c492_i32 = arith.constant 492 : i32
    %25 = tpu.dynamic_rotate %18 by %c492_i32 dim 1 : vector<8x512xf32>, i32 -> vector<8x512xf32>
    %c491_i32 = arith.constant 491 : i32
    %26 = tpu.dynamic_rotate %18 by %c491_i32 dim 1 : vector<8x512xf32>, i32 -> vector<8x512xf32>
    %27 = tpu.concatenate %19, %20, %21, %22, %18, %23, %24, %25, %26 in 0 : vector<8x512xf32>, vector<8x512xf32>, vector<8x512xf32>, vector<8x512xf32>, vector<8x512xf32>, vector<8x512xf32>, vector<8x512xf32>, vector<8x512xf32>, vector<8x512xf32> -> vector<72x512xf32>
    %28 = arith.truncf %27 : vector<72x512xf32> to vector<72x512xbf16>
    %c0_13 = arith.constant 0 : index
    %c0_14 = arith.constant 0 : index
    %29 = vector.load %arg5[%c0_13, %c0_14] : memref<8x72xbf16, #tpu.memory_space<vmem>>, vector<8x72xbf16>
    %cst_15 = arith.constant dense<0.000000e+00> : vector<8x512xf32>
    %30 = tpu.matmul %29, %28, %cst_15 {dimension_numbers = #tpu.dot_dimension_numbers<[1], [0], [0], [1], [0, 0, 1, 1], [], []>} : vector<8x72xbf16>, vector<72x512xbf16>, vector<8x512xf32> -> vector<8x512xf32>
    %c0_16 = arith.constant 0 : index
    %c0_17 = arith.constant 0 : index
    %31 = vector.load %arg6[%c0_16, %c0_17] : memref<8x1xf32, #tpu.memory_space<vmem>>, vector<8x1xf32>
    %32 = vector.broadcast %31 : vector<8x1xf32> to vector<8x512xf32>
    %33 = arith.mulf %30, %32 : vector<8x512xf32>
    %c0_18 = arith.constant 0 : index
    %c0_19 = arith.constant 0 : index
    %34 = vector.load %arg7[%c0_18, %c0_19] : memref<8x1xf32, #tpu.memory_space<vmem>>, vector<8x1xf32>
    %35 = vector.broadcast %34 : vector<8x1xf32> to vector<8x512xf32>
    %36 = arith.addf %33, %35 : vector<8x512xf32>
    %cst_20 = arith.constant 0.000000e+00 : f32
    %37 = vector.broadcast %cst_20 : f32 to vector<8x512xf32>
    %38 = arith.maximumf %36, %37 : vector<8x512xf32>
    %c0_21 = arith.constant 0 : index
    %c0_22 = arith.constant 0 : index
    %39 = vector.load %arg8[%c0_21, %c0_22] : memref<16x8xbf16, #tpu.memory_space<vmem>>, vector<16x8xbf16>
    %40 = arith.truncf %38 : vector<8x512xf32> to vector<8x512xbf16>
    %cst_23 = arith.constant dense<0.000000e+00> : vector<16x512xf32>
    %41 = tpu.matmul %39, %40, %cst_23 {dimension_numbers = #tpu.dot_dimension_numbers<[1], [0], [0], [1], [0, 0, 1, 1], [], []>} : vector<16x8xbf16>, vector<8x512xbf16>, vector<16x512xf32> -> vector<16x512xf32>
    %c0_24 = arith.constant 0 : index
    %c0_25 = arith.constant 0 : index
    %42 = vector.load %arg9[%c0_24, %c0_25] : memref<16x1xf32, #tpu.memory_space<vmem>>, vector<16x1xf32>
    %43 = vector.broadcast %42 : vector<16x1xf32> to vector<16x512xf32>
    %44 = arith.mulf %41, %43 : vector<16x512xf32>
    %c0_26 = arith.constant 0 : index
    %c0_27 = arith.constant 0 : index
    %45 = vector.load %arg10[%c0_26, %c0_27] : memref<16x1xf32, #tpu.memory_space<vmem>>, vector<16x1xf32>
    %46 = vector.broadcast %45 : vector<16x1xf32> to vector<16x512xf32>
    %47 = arith.addf %44, %46 : vector<16x512xf32>
    %cst_28 = arith.constant 0.000000e+00 : f32
    %48 = vector.broadcast %cst_28 : f32 to vector<16x512xf32>
    %49 = arith.maximumf %47, %48 : vector<16x512xf32>
    %c0_29 = arith.constant 0 : index
    %c0_30 = arith.constant 0 : index
    %50 = vector.load %arg10[%c0_29, %c0_30] : memref<16x1xf32, #tpu.memory_space<vmem>>, vector<16x1xf32>
    %cst_31 = arith.constant 0.000000e+00 : f32
    %51 = vector.broadcast %cst_31 : f32 to vector<16x1xf32>
    %52 = arith.maximumf %50, %51 : vector<16x1xf32>
    %53 = vector.shape_cast %2 : vector<1x512xi1> to vector<1x512xi1>
    %54 = vector.broadcast %53 : vector<1x512xi1> to vector<16x512xi1>
    %55 = vector.shape_cast %52 : vector<16x1xf32> to vector<16x1xf32>
    %56 = vector.broadcast %55 : vector<16x1xf32> to vector<16x512xf32>
    %57 = arith.select %54, %49, %56 : vector<16x512xi1>, vector<16x512xf32>
    %c0_32 = arith.constant 0 : index
    %c0_33 = arith.constant 0 : index
    %c0_34 = arith.constant 0 : index
    %58 = vector.load %arg12[%c0_32, %c0_33, %c0_34] : memref<1x16x512xf32, #tpu.memory_space<vmem>>, vector<1x16x512xf32>
    %59 = vector.shape_cast %58 : vector<1x16x512xf32> to vector<16x512xf32>
    %60 = vector.shape_cast %57 : vector<16x512xf32> to vector<1x16x512xf32>
    tpu.vector_store %arg12[%c0_32, %c0_33, %c0_34], %60 {strides = array<i32>} : memref<1x16x512xf32, #tpu.memory_space<vmem>>, vector<1x16x512xf32>,
    return
  }
  func.func @transform_0(%arg0: i32) -> (i32, i32, i32) {
    %c0_i32 = arith.constant 0 : i32
    %c0_i32_0 = arith.constant 0 : i32
    %c0_i32_1 = arith.constant 0 : i32
    return %arg0, %c0_i32, %c0_i32_0 : i32, i32, i32
  }
  func.func @transform_1(%arg0: i32) -> (i32, i32) {
    %c0_i32 = arith.constant 0 : i32
    %c0_i32_0 = arith.constant 0 : i32
    %c0_i32_1 = arith.constant 0 : i32
    return %c0_i32, %c0_i32_0 : i32, i32
  }
  func.func @transform_2(%arg0: i32) -> (i32, i32) {
    %c0_i32 = arith.constant 0 : i32
    %c0_i32_0 = arith.constant 0 : i32
    %c0_i32_1 = arith.constant 0 : i32
    return %c0_i32, %c0_i32_0 : i32, i32
  }
  func.func @transform_3(%arg0: i32) -> (i32, i32) {
    %c0_i32 = arith.constant 0 : i32
    %c0_i32_0 = arith.constant 0 : i32
    %c0_i32_1 = arith.constant 0 : i32
    return %c0_i32, %c0_i32_0 : i32, i32
  }
  func.func @transform_4(%arg0: i32) -> (i32, i32) {
    %c0_i32 = arith.constant 0 : i32
    %c0_i32_0 = arith.constant 0 : i32
    %c0_i32_1 = arith.constant 0 : i32
    return %c0_i32, %c0_i32_0 : i32, i32
  }
  func.func @transform_5(%arg0: i32) -> (i32, i32) {
    %c0_i32 = arith.constant 0 : i32
    %c0_i32_0 = arith.constant 0 : i32
    %c0_i32_1 = arith.constant 0 : i32
    return %c0_i32, %c0_i32_0 : i32, i32
  }
  func.func @transform_6(%arg0: i32) -> (i32, i32) {
    %c0_i32 = arith.constant 0 : i32
    %c0_i32_0 = arith.constant 0 : i32
    %c0_i32_1 = arith.constant 0 : i32
    return %c0_i32, %c0_i32_0 : i32, i32
  }
  func.func @transform_7(%arg0: i32) -> (i32, i32) {
    %c0_i32 = arith.constant 0 : i32
    %c0_i32_0 = arith.constant 0 : i32
    %c0_i32_1 = arith.constant 0 : i32
    return %c0_i32, %c0_i32_0 : i32, i32
  }
  func.func @transform_8(%arg0: i32) -> (i32, i32) {
    %c0_i32 = arith.constant 0 : i32
    %c0_i32_0 = arith.constant 0 : i32
    %c0_i32_1 = arith.constant 0 : i32
    return %c0_i32, %c0_i32_0 : i32, i32
  }
  func.func @transform_9(%arg0: i32) -> (i32, i32) {
    %c0_i32 = arith.constant 0 : i32
    %c0_i32_0 = arith.constant 0 : i32
    %c0_i32_1 = arith.constant 0 : i32
    return %c0_i32, %c0_i32_0 : i32, i32
  }
  func.func @transform_10(%arg0: i32) -> (i32, i32) {
    %c0_i32 = arith.constant 0 : i32
    %c0_i32_0 = arith.constant 0 : i32
    %c0_i32_1 = arith.constant 0 : i32
    return %c0_i32, %c0_i32_0 : i32, i32
  }
  func.func @transform_11(%arg0: i32) -> (i32, i32, i32) {
    %c0_i32 = arith.constant 0 : i32
    %c0_i32_0 = arith.constant 0 : i32
    %c0_i32_1 = arith.constant 0 : i32
    return %arg0, %c0_i32, %c0_i32_0 : i32, i32, i32
  }
}

</mosaic_0001>

<bundles_post_ra>
// kernel: bottleneck_conv_forward.1
= control target key start
LH: loop header
LB: loop body
LE: loop exit
PB: predicated region body
PF: predicated region fallthrough
CT: control target
= control target key end

     0   :  { %s1272_s17 = smov 0   ;;  %s1512_s0 = inlined_call_operand.vmem [shape: bf16[2,4,512], index: 0, kind: input, shape index: {}]   ;;  %s1513_s1 = inlined_call_operand.vmem [shape: bf16[8,4], index: 1, kind: input, shape index: {}]   ;;  %s1514_s2 = inlined_call_operand.vmem [shape: f32[8,1], index: 2, kind: input, shape index: {}]   ;;  %s1515_s3 = inlined_call_operand.vmem [shape: f32[8,1], index: 3, kind: input, shape index: {}]   ;;  %s1516_s4 = inlined_call_operand.vmem [shape: bf16[8,72], index: 4, kind: input, shape index: {}]   ;;  %s1517_s5 = inlined_call_operand.vmem [shape: f32[8,1], index: 5, kind: input, shape index: {}]   ;;  %s1518_s6 = inlined_call_operand.vmem [shape: f32[8,1], index: 6, kind: input, shape index: {}]   ;;  %s1519_s7 = inlined_call_operand.vmem [shape: bf16[16,8], index: 7, kind: input, shape index: {}]   ;;  %s1520_s8 = inlined_call_operand.vmem [shape: f32[16,1], index: 8, kind: input, shape index: {}]   ;;  %s1521_s9 = inlined_call_operand.vmem [shape: f32[16,1], index: 9, kind: input, shape index: {}]   ;;  %s1522_s10 = inlined_call_operand.vmem [shape: f32[1,512], index: 10, kind: input, shape index: {}]   ;;  %s1523_s11 = inlined_call_operand.vmem [shape: f32[2,16,512], index: 11, kind: output, shape index: {}]  }
   0x1 LB: > { %s1052_s18 = sadd.s32 4294967295, %s1199_s17   ;;  %p1056_p0 = scmp.ge.s32.totalorder %s1199_s17, 1  ;;  %s1199_s17 = sphi %s1272_s17, %s21_s17  }
   0x2   : > { %p337_p1 = scmp.lt.s32.totalorder %s1199_s17, 3 }
   0x4   : > { %p338_p2 = pnand %p1056_p0, %p337_p1 }
   0x5   : > { %p377_p3 = scmp.lt.s32.totalorder (!%p338_p2), %s1052_s18, 1  ;;  %v397_v0 = vlaneseq (!%p338_p2)  ;;  %v509_v1 = vld [vmem:[%s1514_s2] sm:$0xff] (!%p338_p2)  ;;  %v1201_v2 = vmov (!%p338_p2), 1983009808   ;;  %v1202_v4 = vmov (!%p338_p2), 0   ;;  %vm414_vm0 = vcmask (!%p338_p2), 1041408  }
   0x6   : > { %341 = sbr.rel (%p338_p2) target bundleno = 851 (0x353), region = 64  ;;  %v395_v3 = vunpack.c.l.s4 (!%p338_p2), %v1201_v2  ;;  %459 = vmatprep.mubr.bf16.mxu0 (!%p338_p2), %v1202_v4  ;;  %500 = vmatprep.mubr.bf16.mxu1 (!%p338_p2), %v1202_v4  ;;  %v519_v7 = vld [vmem:[%s1515_s3] sm:$0xff] (!%p338_p2)  ;;  %vm410_vm1 = vcmask (!%p338_p2), 31744   ;;  %s1203_s12 = smov (!%p338_p2), 20   ;;  %v922_v61 = vld [vmem:[%s1520_s8 + $0x8] sm:$0xff] (!%p338_p2)  ;;  %vm1211_vm12 = vmmov (!%p338_p2), 1  }
   0x7   : > { %v398_v5 = vshrl.u32 (!%p338_p2), %v397_v0, 7  ;;  %1109 = vset.pattern.permute.xlu0 (!%p338_p2), %v1202_v4  ;;  %1190 = vset.pattern.permute.xlu1 (!%p338_p2), %v1202_v4  ;;  %v390_v17 = vld [vmem:[%s1513_s1] sm:$0xf] (!%p338_p2)  ;;  %s1204_s13 = smov (!%p338_p2), 21   ;;  %s1205_s14 = smov (!%p338_p2), 19   ;;  %v942_v62 = vld [vmem:[%s1521_s9 + $0x8] sm:$0xff] (!%p338_p2) }
   0x8   : > { %v396_v6 = vunpack.c.0.s8 (!%p338_p2), %v395_v3  ;;  %512 = vperm.xlu0 (!%p338_p2), %1109, %v509_v1   ;;  %v388_v18 = vld [vmem:[%s1522_s10] sm:$0xf] (!%p338_p2)  ;;  %s1206_s15 = smov (!%p338_p2), 1   ;;  %s1207_s16 = smov (!%p338_p2), 127   ;;  %v970_v63 = vmax.f32 (!%p338_p2), %v942_v62, 0.0  ;;  %v1365_v1 = vand.u32 (!%p338_p2), 127, %v397_v0 }
   0x9   : > { %vm389_vm2 = vcmp.ne.f32.partialorder (!%p338_p2), %v388_v18, 0.0  ;;  %v536_v20 = vsub.s32 (!%p338_p2), 0, %v398_v5  ;;  %v540_v22 = vsub.s32 (!%p338_p2), 1, %v398_v5  ;;  %v544_v23 = vsub.s32 (!%p338_p2), 2, %v398_v5  ;;  %s1208_s19 = smov (!%p338_p2), 109   ;;  %s1209_s20 = smov (!%p338_p2), 108  }
   0xa   : > { %v399_v8 = vsub.s32 (!%p338_p2), %v396_v6, %v398_v5  ;;  %v533_v21 = vsel (!%p338_p2), %vm389_vm2, 1, %v1202_v4  ;;  %v548_v24 = vsub.s32 (!%p338_p2), 3, %v398_v5  ;;  %v784_v56 = vld [vmem:[%s1517_s5] sm:$0xff] (!%p338_p2)  ;;  %vm568_vm7 = vcmp.lt.s32.totalorder (!%p338_p2), %v1365_v1, 21 }
   0xb   : > { %v1306_v26 = vrot.slane (!%p338_p2), %v533_v21, %v536_v20  ;;  %v1308_v30 = vrot.slane (!%p338_p2), %v533_v21, %v540_v22  ;;  %v1312_v36 = vrot.slane (!%p338_p2), %v533_v21, %v544_v23  ;;  %v921_v57 = vld [vmem:[%s1520_s8] sm:$0xff] (!%p338_p2)  ;;  %vm581_vm8 = vcmp.lt.s32.totalorder (!%p338_p2), %v1365_v1, 20 }
   0xc   : > { %522 = vperm.xlu0 (!%p338_p2), %1109, %v519_v7   ;;  %v1314_v39 = vrot.slane (!%p338_p2), %v533_v21, %v548_v24  ;;  %v941_v58 = vld [vmem:[%s1521_s9] sm:$0xff] (!%p338_p2)  ;;  %vm594_vm9 = vcmp.lt.s32.totalorder (!%p338_p2), %v1365_v1, 19  ;;  %vm607_vm10 = vcmp.lt.s32.totalorder (!%p338_p2), %v1365_v1, 1  ;;  %vm620_vm11 = vcmp.lt.s32.totalorder (!%p338_p2), %v1365_v1, 127 }
   0xd   : > { %s1531_s18 = smov (!%p377_p3, %s1052_s18), 1  ;;  %vm550_vm3 = vcmp.eq.s32.totalorder %v1306_v26, 1  ;;  %vm551_vm4 = vcmp.eq.s32.totalorder %v1308_v30, 1  ;;  %vm552_vm5 = vcmp.eq.s32.totalorder %v1312_v36, 1  ;;  %v969_v59 = vmax.f32 %v941_v58, 0.0  ;;  %v794_v60 = vld [vmem:[%s1518_s6] sm:$0xff] }
   0xe   : > { %s1088_s21 = sshll.u32 %s1531_s18, 3  ;;  %vm553_vm6 = vcmp.eq.s32.totalorder %v1314_v39, 1  ;;  %vm1409_vm13 = vmpackc.low %vm1211_vm12, %vm551_vm4  ;;  %vm659_vm2 = vcmp.lt.s32.totalorder %v1365_v1, 107 }
   0xf   : > { %s381_s26 = scalar_lea.vmem %s1512_s0, %s1088_s21  ;;  %s1210_s21 = smov 107   ;;  %vm1418_vm14 = vmpackc.low %vm1211_vm12, %vm553_vm6 }
  0x10   : > { %v391_v9 = vld [vmem:[%s381_s26] sm:$0xff]  ;;  %vm1431_vm15 = vmpackc.low %vm1211_vm12, %vm550_vm3 }
  0x11   : > { %v400_v10 = vrot.slane %v391_v9, %v399_v8  ;;  %v393_v11 = vcombine.high %v391_v9, %v391_v9 }
  0x13   : > { %v408_v12 = vcombine.high %v400_v10, %v400_v10  ;;  %v416_v13 = vsel %vm414_vm0, %v400_v10, 0  ;;  %v407_v14 = vrot.slane %v393_v11, %v399_v8 }
  0x15   : > { %1061 = vmatprep.subr.msk.bf16.mxu0 %vm414_vm0, %v408_v12  ;;  %v409_v15 = vcombine.high %v407_v14, %v407_v14  ;;  %v422_v16 = vsel %vm414_vm0, %v407_v14, 0 }
  0x16   : > { %428 = vmatpush1.bf16.msra.mxu0 %v416_v13 }
  0x17   : > { %1063 = vmatprep.subr.msk.bf16.mxu1 %vm414_vm0, %v409_v15  ;;  %vm1076_vm0 = vmpackc.low %vm1211_vm12, %vm552_vm5 }
  0x18   : > { %469 = vmatpush1.bf16.msra.mxu1 %v422_v16 }
  0x19   : > { %1062 = vmatmul.mubr.msk.bf16.vlgmr.msra.gmra.mrb[0].mxu0 %vm410_vm1, %v390_v17 }
  0x1a   : > { %734 = vmatprep.mubr.bf16.mxu0 %v1202_v4 }
  0x1b   : > { %1064 = vmatmul.mubr.msk.bf16.vlgmr.msra.gmra.mrb[0].mxu1 %vm410_vm1, %v390_v17  ;;  %vm646_vm1 = vcmp.lt.s32.totalorder %v1365_v1, 108 }
  0x1c   : > { %775 = vmatprep.mubr.bf16.mxu1 %v1202_v4 }
  0x87   : > { %v513_v19 = vpop.permute.xlu0 %512 }
  0x8b   : > { %v523_v27 = vpop.permute.xlu0 %522 }
  0xec   : > { %v461_v25 = vpop.f32.mrb[0].mxu0 }
  0xed   : > { %v515_v28 = vmul.f32 %v513_v19, %v461_v25  ;;  %v463_v29 = vpop.f32.mrb[1].mxu0 }
  0xee   : > { %v516_v31 = vmul.f32 %v513_v19, %v463_v29  ;;  %v465_v32 = vpop.f32.mrb[2].mxu0  ;;  %v502_v33 = vpop.f32.mrb[0].mxu1 }
  0xef   : > { %v1310_v34 = vadd.f32 %v523_v27, %v515_v28  ;;  %v517_v35 = vmul.f32 %v513_v19, %v502_v33  ;;  %v466_v37 = vpop.f32.mrb[3].mxu0  ;;  %v504_v38 = vpop.f32.mrb[1].mxu1 }
  0xf0   : > { %v1317_v40 = vadd.f32 %v523_v27, %v516_v31  ;;  %v518_v41 = vmul.f32 %v513_v19, %v504_v38  ;;  %v506_v42 = vpop.f32.mrb[2].mxu1 }
  0xf1   : > { %v529_v43 = vmax.f32 %v1310_v34, 0.0  ;;  %v1321_v44 = vadd.f32 %v523_v27, %v517_v35  ;;  %v507_v45 = vpop.f32.mrb[3].mxu1 }
  0xf2   : > { %v530_v46 = vmax.f32 %v1317_v40, 0.0  ;;  %v1324_v47 = vadd.f32 %v523_v27, %v518_v41 }
  0xf3   : > { %v554_v48 = vsel %vm550_vm3, %v529_v43, 0.0  ;;  %v531_v49 = vmax.f32 %v1321_v44, 0.0 }
  0xf4   : > { %v555_v50 = vsel %vm551_vm4, %v530_v46, 0.0  ;;  %v532_v51 = vmax.f32 %v1324_v47, 0.0 }
  0xf5   : > { %v1115_v52 = vpack.i.bf16 %v555_v50, %v554_v48  ;;  %v556_v53 = vsel %vm552_vm5, %v531_v49, 0.0 }
  0xf6   : > { %v557_v54 = vsel %vm553_vm6, %v532_v51, 0.0 }
  0xf7   : > { %1116 = vrot.lane.b32.xlu0 %v1115_v52, %s1203_s12  ;;  %1111 = vrot.lane.b32.xlu1 %v1115_v52, %s1204_s13  ;;  %v1150_v55 = vpack.i.bf16 %v557_v54, %v556_v53 }
  0xfb   : > { %1121 = vrot.lane.b32.xlu0 %v1115_v52, %s1205_s14  ;;  %1151 = vrot.lane.b32.xlu1 %v1150_v55, %s1204_s13 }
  0xff   : > { %1126 = vrot.lane.b32.xlu0 %v1115_v52, %s1206_s15  ;;  %1156 = vrot.lane.b32.xlu1 %v1150_v55, %s1203_s12 }
 0x103   : > { %1131 = vrot.lane.b32.xlu0 %v1115_v52, %s1207_s16  ;;  %1161 = vrot.lane.b32.xlu1 %v1150_v55, %s1205_s14 }
 0x107   : > { %1136 = vrot.lane.b32.xlu0 %v1115_v52, %s1208_s19  ;;  %1166 = vrot.lane.b32.xlu1 %v1150_v55, %s1206_s15 }
 0x10b   : > { %1141 = vrot.lane.b32.xlu0 %v1115_v52, %s1209_s20  ;;  %1171 = vrot.lane.b32.xlu1 %v1150_v55, %s1207_s16 }
 0x10f   : > { %1146 = vrot.lane.b32.xlu0 %v1115_v52, %s1210_s21  ;;  %1176 = vrot.lane.b32.xlu1 %v1150_v55, %s1208_s19 }
 0x113   : > { %787 = vperm.xlu0 %1109, %v784_v56   ;;  %1181 = vrot.lane.b32.xlu1 %v1150_v55, %s1209_s20 }
 0x117   : > { %925 = vperm.xlu0 %1109, %v921_v57   ;;  %1186 = vrot.lane.b32.xlu1 %v1150_v55, %s1210_s21  ;;  %s1089_s21 = sshll.u32 %s1531_s18, 6 }
 0x118   : > { %s386_s24 = scalar_lea.vmem %s1523_s11, %s1089_s21 }
 0x11b   : > { %945 = vperm.xlu0 %1109, %v941_v58   ;;  %797 = vperm.xlu1 %1190, %v794_v60  }
 0x11f   : > { %973 = vperm.xlu0 %1109, %v969_v59   ;;  %930 = vperm.xlu1 %1190, %v922_v61  }
 0x123   : > { %950 = vperm.xlu1 %1190, %v942_v62  }
 0x127   : > { %978 = vperm.xlu1 %1190, %v970_v63  }
 0x169   : > { %v1117_v2 = vpop.permute.xlu0 %1116  ;;  %v1112_v3 = vpop.permute.xlu1 %1111 }
 0x16a   : > { %v1119_v5 = vunpack.i.h.bf16 %v1117_v2  ;;  %v1118_v6 = vunpack.i.l.bf16 %v1117_v2  ;;  %v1114_v7 = vunpack.i.h.bf16 %v1112_v3  ;;  %v1113_v8 = vunpack.i.l.bf16 %v1112_v3 }
 0x16c   : > { %v571_v9 = vsel %vm568_vm7, %v1113_v8, %v1114_v7  ;;  %v584_v10 = vsel %vm581_vm8, %v1118_v6, %v1119_v5 }
 0x16d   : > { %v1122_v11 = vpop.permute.xlu0 %1121  ;;  %v1152_v12 = vpop.permute.xlu1 %1151  ;;  %v665_v0 = vpack.c.bf16 %v584_v10, %v571_v9 }
 0x16e   : > { %v1124_v13 = vunpack.i.h.bf16 %v1122_v11  ;;  %v1123_v14 = vunpack.i.l.bf16 %v1122_v11  ;;  %v1154_v15 = vunpack.i.h.bf16 %v1152_v12  ;;  %v1153_v16 = vunpack.i.l.bf16 %v1152_v12 }
 0x16f   : > { %702 = vmatprep.subr.bf16.mxu0 %v665_v0 }
 0x170   : > { %v572_v23 = vsel %vm568_vm7, %v1154_v15, %v1113_v8  ;;  %v570_v24 = vsel %vm568_vm7, %v1114_v7, %v1153_v16  ;;  %v569_v25 = vsel %vm568_vm7, %v1153_v16, %v1154_v15  ;;  %v597_v27 = vsel %vm594_vm9, %v1123_v14, %v1124_v13 }
 0x171   : > { %v1127_v17 = vpop.permute.xlu0 %1126  ;;  %v1157_v18 = vpop.permute.xlu1 %1156  ;;  %vm633_vm7 = vcmp.lt.s32.totalorder %v1365_v1, 109 }
 0x172   : > { %v1129_v19 = vunpack.i.h.bf16 %v1127_v17  ;;  %v1128_v20 = vunpack.i.l.bf16 %v1127_v17  ;;  %v1159_v21 = vunpack.i.h.bf16 %v1157_v18  ;;  %v1158_v22 = vunpack.i.l.bf16 %v1157_v18 }
 0x174   : > { %v585_v28 = vsel %vm581_vm8, %v1159_v21, %v1118_v6  ;;  %v583_v29 = vsel %vm581_vm8, %v1119_v5, %v1158_v22  ;;  %v582_v31 = vsel %vm581_vm8, %v1158_v22, %v1159_v21  ;;  %v610_v32 = vsel %vm607_vm10, %v1128_v20, %v1129_v19 }
 0x175   : > { %v664_v33 = vpack.c.bf16 %v585_v28, %v572_v23  ;;  %v666_v35 = vpack.c.bf16 %v583_v29, %v570_v24  ;;  %v1132_v37 = vpop.permute.xlu0 %1131  ;;  %v1162_v38 = vpop.permute.xlu1 %1161  ;;  %v667_v41 = vpack.c.bf16 %v582_v31, %v569_v25  ;;  %v669_v42 = vpack.c.bf16 %v610_v32, %v597_v27 }
 0x176   : > { %v1164_v45 = vunpack.i.h.bf16 %v1162_v38  ;;  %v1163_v48 = vunpack.i.l.bf16 %v1162_v38  ;;  %v1134_v55 = vunpack.i.h.bf16 %v1132_v37  ;;  %v1133_v56 = vunpack.i.l.bf16 %v1132_v37 }
 0x177   : > { %703 = vmatpush1.bf16.msra.mxu0 %v664_v33  ;;  %743 = vmatprep.subr.bf16.mxu1 %v667_v41  ;;  %vm689_vm8 = vcmask 1043456  }
 0x178   : > { %704 = vmatprep.subr.bf16.mxu0 %v669_v42  ;;  %744 = vmatpush1.bf16.msra.mxu1 %v666_v35  ;;  %v598_v57 = vsel %vm594_vm9, %v1164_v45, %v1123_v14  ;;  %v596_v58 = vsel %vm594_vm9, %v1124_v13, %v1163_v48  ;;  %v595_v61 = vsel %vm594_vm9, %v1163_v48, %v1164_v45  ;;  %vm685_vm9 = vcmask 588800  }
 0x179   : > { %v1391_v50 = vpop.permute.xlu0 %1136  ;;  %v1167_v52 = vpop.permute.xlu1 %1166  ;;  %v623_v10 = vsel %vm620_vm11, %v1133_v56, %v1134_v55 }
 0x17a   : > { %v1169_v53 = vunpack.i.h.bf16 %v1167_v52  ;;  %v1168_v54 = vunpack.i.l.bf16 %v1167_v52  ;;  %v1139_v34 = vunpack.i.h.bf16 %v1391_v50 }
 0x17c   : > { %v611_v59 = vsel %vm607_vm10, %v1169_v53, %v1128_v20  ;;  %v609_v60 = vsel %vm607_vm10, %v1129_v19, %v1168_v54  ;;  %v608_v62 = vsel %vm607_vm10, %v1168_v54, %v1169_v53  ;;  %v1069_v20 = vpack.c.bf16 %v623_v10, %v529_v43 }
 0x17d   : > { %v668_v63 = vpack.c.bf16 %v611_v59, %v598_v57  ;;  %v670_v2 = vpack.c.bf16 %v609_v60, %v596_v58  ;;  %v1142_v3 = vpop.permute.xlu0 %1141  ;;  %v1172_v5 = vpop.permute.xlu1 %1171  ;;  %v671_v6 = vpack.c.bf16 %v608_v62, %v595_v61  ;;  %v1138_v43 = vunpack.i.l.bf16 %v1391_v50  ;;  %v684_v61 = vld [vmem:[%s1516_s4] sm:$0xf] }
 0x17e   : > { %v1174_v7 = vunpack.i.h.bf16 %v1172_v5  ;;  %v1173_v8 = vunpack.i.l.bf16 %v1172_v5  ;;  %v1144_v21 = vunpack.i.h.bf16 %v1142_v3  ;;  %v1143_v22 = vunpack.i.l.bf16 %v1142_v3 }
 0x17f   : > { %705 = vmatpush1.bf16.msra.mxu0 %v668_v63  ;;  %745 = vmatprep.subr.bf16.mxu1 %v671_v6  ;;  %v636_v35 = vsel %vm633_vm7, %v1138_v43, %v1139_v34  ;;  %vm819_vm10 = vcmask 64512  }
 0x180   : > { %v624_v12 = vsel %vm620_vm11, %v1174_v7, %v1133_v56  ;;  %v621_v0 = vsel %vm620_vm11, %v1173_v8, %v1174_v7  ;;  %v622_v13 = vsel %vm620_vm11, %v1134_v55, %v1173_v8  ;;  %746 = vmatpush1.bf16.msra.mxu1 %v670_v2  ;;  %v649_v24 = vsel %vm646_vm1, %v1143_v22, %v1144_v21 }
 0x181   : > { %v1074_v15 = vpack.c.bf16 %v624_v12, %v532_v51  ;;  %v1066_v16 = vpack.c.bf16 %v622_v13, %v530_v46  ;;  %v1077_v17 = vpack.c.bf16 %v621_v0, %v531_v49  ;;  %v1147_v18 = vpop.permute.xlu0 %1146  ;;  %v1177_v19 = vpop.permute.xlu1 %1176  ;;  %v676_v45 = vpack.c.bf16 %v649_v24, %v636_v35 }
 0x182   : > { %v1179_v23 = vunpack.i.h.bf16 %v1177_v19  ;;  %v1178_v47 = vunpack.i.l.bf16 %v1177_v19  ;;  %v1149_v40 = vunpack.i.h.bf16 %v1147_v18  ;;  %v1148_v44 = vunpack.i.l.bf16 %v1147_v18 }
 0x183   : > { %1067 = vmatprep.subr.msk.bf16.mxu0 %vm1409_vm13, %v1066_v16  ;;  %1075 = vmatprep.subr.msk.bf16.mxu1 %vm1418_vm14, %v1074_v15 }
 0x184   : > { %1070 = vmatpush1.bf16.msk.msra.mxu0 %vm1431_vm15, %v1069_v20  ;;  %1078 = vmatpush1.bf16.msk.msra.mxu1 %vm1076_vm0, %v1077_v17  ;;  %v634_v25 = vsel %vm633_vm7, %v1178_v47, %v1179_v23  ;;  %v635_v27 = vsel %vm633_vm7, %v1139_v34, %v1178_v47  ;;  %v637_v28 = vsel %vm633_vm7, %v1179_v23, %v1138_v43 }
 0x185   : > { %v1182_v46 = vpop.permute.xlu1 %1181  ;;  %v662_v33 = vsel %vm659_vm2, %v1148_v44, %v1149_v40 }
 0x186   : > { %v1184_v49 = vunpack.i.h.bf16 %v1182_v46  ;;  %v1183_v51 = vunpack.i.l.bf16 %v1182_v46  ;;  %v680_v52 = vpack.c.bf16 %v662_v33, %v662_v33 }
 0x188   : > { %v647_v29 = vsel %vm646_vm1, %v1183_v51, %v1184_v49  ;;  %v648_v31 = vsel %vm646_vm1, %v1144_v21, %v1183_v51  ;;  %v650_v32 = vsel %vm646_vm1, %v1184_v49, %v1143_v22  ;;  %v691_v59 = vsel %vm689_vm8, %v680_v52, 0 }
 0x189   : > { %v678_v37 = vpack.c.bf16 %v647_v29, %v634_v25  ;;  %v1187_v38 = vpop.permute.xlu1 %1186  ;;  %v677_v41 = vpack.c.bf16 %v648_v31, %v635_v27  ;;  %v679_v42 = vpack.c.bf16 %v650_v32, %v637_v28 }
 0x18a   : > { %v1189_v48 = vunpack.i.h.bf16 %v1187_v38  ;;  %v1188_v50 = vunpack.i.l.bf16 %v1187_v38 }
 0x18b   : > { %708 = vmatprep.subr.bf16.mxu0 %v677_v41  ;;  %749 = vmatprep.subr.bf16.mxu1 %v679_v42 }
 0x18c   : > { %v663_v53 = vsel %vm659_vm2, %v1189_v48, %v1148_v44  ;;  %v661_v54 = vsel %vm659_vm2, %v1149_v40, %v1188_v50  ;;  %709 = vmatpush1.bf16.msra.mxu0 %v676_v45  ;;  %750 = vmatpush1.bf16.msra.mxu1 %v678_v37  ;;  %v660_v55 = vsel %vm659_vm2, %v1188_v50, %v1189_v48  ;;  %v1192_v44 = vld [vmem:[%s1519_s7] sm:$0xff]  }
 0x18d   : > { %v683_v56 = vpack.c.bf16 %v663_v53, %v663_v53  ;;  %v681_v57 = vpack.c.bf16 %v661_v54, %v661_v54  ;;  %v682_v58 = vpack.c.bf16 %v660_v55, %v660_v55 }
 0x18f   : > { %1071 = vmatprep.subr.msk.bf16.mxu0 %vm689_vm8, %v681_v57  ;;  %1079 = vmatprep.subr.msk.bf16.mxu1 %vm689_vm8, %v683_v56  ;;  %v697_v60 = vsel %vm689_vm8, %v682_v58, 0 }
 0x190   : > { %711 = vmatpush1.bf16.msra.mxu0 %v691_v59  ;;  %752 = vmatpush1.bf16.msra.mxu1 %v697_v60 }
 0x192   : > { %v788_v1 = vpop.permute.xlu0 %787 }
 0x193   : > { %1072 = vmatmul.mubr.msk.bf16.vlgmr.msra.gmra.mrb[4].mxu0 %vm685_vm9, %v684_v61  ;;  %1080 = vmatmul.mubr.msk.bf16.vlgmr.msra.gmra.mrb[4].mxu1 %vm685_vm9, %v684_v61 }
 0x194   : > { %867 = vmatprep.mubr.bf16.mxu0 %v1202_v4  ;;  %910 = vmatprep.mubr.bf16.mxu1 %v1202_v4 }
 0x196   : > { %v926_v34 = vpop.permute.xlu0 %925 }
 0x19a   : > { %v798_v62 = vpop.permute.xlu1 %797  ;;  %v946_v46 = vpop.permute.xlu0 %945 }
 0x19e   : > { %v931_v43 = vpop.permute.xlu1 %930  ;;  %v974_v59 = vpop.permute.xlu0 %973 }
 0x1a2   : > { %v951_v49 = vpop.permute.xlu1 %950 }
 0x266   : > { %v736_v63 = vpop.f32.mrb[4].mxu0  ;;  %v777_v2 = vpop.f32.mrb[4].mxu1 }
 0x267   : > { %v790_v3 = vmul.f32 %v788_v1, %v736_v63  ;;  %v792_v5 = vmul.f32 %v788_v1, %v777_v2  ;;  %v738_v6 = vpop.f32.mrb[5].mxu0  ;;  %v779_v7 = vpop.f32.mrb[5].mxu1 }
 0x268   : > { %v791_v8 = vmul.f32 %v788_v1, %v738_v6  ;;  %v793_v9 = vmul.f32 %v788_v1, %v779_v7  ;;  %v740_v10 = vpop.f32.mrb[6].mxu0  ;;  %v781_v11 = vpop.f32.mrb[6].mxu1 }
 0x269   : > { %v800_v12 = vadd.f32 %v798_v62, %v790_v3  ;;  %v802_v0 = vadd.f32 %v798_v62, %v792_v5  ;;  %v741_v13 = vpop.f32.mrb[7].mxu0  ;;  %v782_v14 = vpop.f32.mrb[7].mxu1 }
 0x26a   : > { %v801_v15 = vadd.f32 %v798_v62, %v791_v8  ;;  %v803_v16 = vadd.f32 %v798_v62, %v793_v9  ;;  %v979_v6 = vpop.permute.xlu1 %978 }
 0x26b   : > { %v804_v17 = vmax.f32 %v800_v12, 0.0  ;;  %v806_v4 = vmax.f32 %v802_v0, 0.0 }
 0x26c   : > { %v805_v18 = vmax.f32 %v801_v15, 0.0  ;;  %v807_v19 = vmax.f32 %v803_v16, 0.0 }
 0x26d   : > { %v810_v20 = vpack.c.bf16 %v804_v17, %v804_v17  ;;  %v812_v21 = vpack.c.bf16 %v806_v4, %v806_v4 }
 0x26e   : > { %v811_v22 = vpack.c.bf16 %v805_v18, %v805_v18  ;;  %v813_v23 = vpack.c.bf16 %v807_v19, %v807_v19 }
 0x26f   : > { %v824_v47 = vsel %vm689_vm8, %v810_v20, 0  ;;  %v830_v40 = vsel %vm689_vm8, %v812_v21, 0 }
 0x270   : > { %1082 = vmatprep.subr.msk.bf16.mxu0 %vm689_vm8, %v811_v22  ;;  %1084 = vmatprep.subr.msk.bf16.mxu1 %vm689_vm8, %v813_v23 }
 0x271   : > { %836 = vmatpush1.bf16.msra.mxu0 %v824_v47  ;;  %879 = vmatpush1.bf16.msra.mxu1 %v830_v40 }
 0x274   : > { %1083 = vmatmul.mubr.msk.bf16.vlgmr.msra.gmra.mrb[8].mxu0 %vm819_vm10, %v1192_v44  ;;  %1085 = vmatmul.mubr.msk.bf16.vlgmr.msra.gmra.mrb[8].mxu1 %vm819_vm10, %v1192_v44 }
 0x347   : > { %v869_v51 = vpop.f32.mrb[8].mxu0  ;;  %v912_v24 = vpop.f32.mrb[8].mxu1 }
 0x348   : > { %v933_v25 = vmul.f32 %v926_v34, %v869_v51  ;;  %v935_v27 = vmul.f32 %v926_v34, %v912_v24  ;;  %v871_v28 = vpop.f32.mrb[9].mxu0  ;;  %v914_v29 = vpop.f32.mrb[9].mxu1 }
 0x349   : > { %v934_v31 = vmul.f32 %v926_v34, %v871_v28  ;;  %v936_v32 = vmul.f32 %v926_v34, %v914_v29  ;;  %v873_v33 = vpop.f32.mrb[10].mxu0  ;;  %v916_v35 = vpop.f32.mrb[10].mxu1 }
 0x34a   : > { %v953_v37 = vadd.f32 %v946_v46, %v933_v25  ;;  %v955_v38 = vadd.f32 %v946_v46, %v935_v27  ;;  %v937_v41 = vmul.f32 %v931_v43, %v873_v33  ;;  %v939_v42 = vmul.f32 %v931_v43, %v916_v35  ;;  %v875_v45 = vpop.f32.mrb[11].mxu0  ;;  %v918_v48 = vpop.f32.mrb[11].mxu1 }
 0x34b   : > { %v954_v50 = vadd.f32 %v946_v46, %v934_v31  ;;  %v956_v52 = vadd.f32 %v946_v46, %v936_v32  ;;  %v938_v53 = vmul.f32 %v931_v43, %v875_v45  ;;  %v940_v54 = vmul.f32 %v931_v43, %v918_v48 }
 0x34c   : > { %v961_v55 = vmax.f32 %v953_v37, 0.0  ;;  %v963_v56 = vmax.f32 %v955_v38, 0.0  ;;  %v957_v57 = vadd.f32 %v951_v49, %v937_v41  ;;  %v959_v58 = vadd.f32 %v951_v49, %v939_v42 }
 0x34d   : > { %v962_v60 = vmax.f32 %v954_v50, 0.0  ;;  %v964_v61 = vmax.f32 %v956_v52, 0.0  ;;  %v958_v1 = vadd.f32 %v951_v49, %v938_v53  ;;  %v960_v62 = vadd.f32 %v951_v49, %v940_v54 }
 0x34e   : > { %v981_v63 = vsel %vm550_vm3, %v961_v55, %v974_v59  ;;  %v983_v2 = vsel %vm552_vm5, %v963_v56, %v974_v59  ;;  %v965_v3 = vmax.f32 %v957_v57, 0.0  ;;  %v967_v5 = vmax.f32 %v959_v58, 0.0 }
 0x34f   : > { %989 = vst [vmem:[%s386_s24] sm:$0xff] %v981_v63  ;;  %991 = vst [vmem:[%s386_s24 + $0x10] sm:$0xff] %v983_v2  ;;  %v982_v7 = vsel %vm551_vm4, %v962_v60, %v974_v59  ;;  %v984_v8 = vsel %vm553_vm6, %v964_v61, %v974_v59  ;;  %v966_v9 = vmax.f32 %v958_v1, 0.0  ;;  %v968_v10 = vmax.f32 %v960_v62, 0.0 }
 0x350   : > { %990 = vst [vmem:[%s386_s24 + $0x8] sm:$0xff] %v982_v7  ;;  %992 = vst [vmem:[%s386_s24 + $0x18] sm:$0xff] %v984_v8  ;;  %v985_v11 = vsel %vm550_vm3, %v965_v3, %v979_v6  ;;  %v987_v12 = vsel %vm552_vm5, %v967_v5, %v979_v6 }
 0x351   : > { %993 = vst [vmem:[%s386_s24 + $0x20] sm:$0xff] %v985_v11  ;;  %995 = vst [vmem:[%s386_s24 + $0x30] sm:$0xff] %v987_v12  ;;  %v986_v0 = vsel %vm551_vm4, %v966_v9, %v979_v6  ;;  %v988_v13 = vsel %vm553_vm6, %v968_v10, %v979_v6 }
 0x352   : > { %994 = vst [vmem:[%s386_s24 + $0x28] sm:$0xff] %v986_v0  ;;  %996 = vst [vmem:[%s386_s24 + $0x38] sm:$0xff] %v988_v13 }
 0x353 PF: > { %s21_s17 = sadd.s32 1, %s1199_s17  }
 0x354   : > { %p18_p4 = scmp.ge.s32.totalorder %s21_s17, 4  }
 0x356   :  { %20 = sbr.rel (!%p18_p4) target bundleno = 1 (0x1), region = 94 }

</bundles_post_ra>
